<compile_context>
chip_gen: v7x
topology: tpu7x:2x2x1
jax: 0.10.0
libtpu: 0.0.40
codegen_flags: <defaults>
</compile_context>

<pallas_src>
import functools

import jax
import jax.numpy as jnp
from jax.experimental import pallas as pl
from jax.experimental.pallas import tpu as pltpu


# ----------------------------------------------------------------------------
# Kernels
# ----------------------------------------------------------------------------
def channel_attention_kernel(x_ref, w1t_ref, w2t_ref, o_ref, *, inv_hw):
    """Fused pool + fc + sigmoid + scale for one (Bt, C, H*W) tile."""
    # Global average pool over the spatial (lane) axis, f32 accumulation.
    # inv_hw is a Python-time constant -> single scalar-constant VPU multiply.
    pooled = jnp.sum(x_ref[...], axis=-1, dtype=jnp.float32) * inv_hw   # (Bt, C)

    # fc: two bias-free 1x1 convs == two tiny matmuls with pre-transposed
    # weights (C_in, C_out). Feed operands in the weights' native dtype so the
    # MXU uses its native (e.g. bf16) path; accumulate in f32.
    w1t = w1t_ref[...]
    w2t = w2t_ref[...]
    h = jnp.dot(pooled.astype(w1t.dtype), w1t, preferred_element_type=jnp.float32)
    h = jnp.maximum(h, 0.0)
    y = jax.nn.sigmoid(
        jnp.dot(h.astype(w2t.dtype), w2t, preferred_element_type=jnp.float32)
    )                                                                   # (Bt, C)

    # Re-read x_ref for the scale pass (don't keep the full tile live across
    # the fc chain). Broadcast the per-channel gate over the lane axis and
    # multiply in the input dtype.
    gate = y.astype(o_ref.dtype)[:, :, None]
    o_ref[...] = (x_ref[...] * gate).astype(o_ref.dtype)


def channel_scale_kernel(gate_ref, x_ref, o_ref):
    """Two-pass fallback, pass 2: out = x * gate, spatially sub-tiled."""
    g = gate_ref[...].astype(x_ref.dtype)          # (Bt, C, 1)
    o_ref[...] = (x_ref[...] * g).astype(o_ref.dtype)


# ----------------------------------------------------------------------------
# Wrapper
# ----------------------------------------------------------------------------
def _vmem_capacity_bytes():
    """Physical VMEM per TensorCore; conservative (v7x) fallback if unknown."""
    try:
        return int(pltpu.get_tpu_info().vmem_capacity_bytes)
    except Exception:
        return 64 * 1024 * 1024


def _pick_batch_tile(B, per_image_bytes, tile_budget_bytes):
    """Biggest Bt within the tile budget, but keep enough grid steps so the
    BlockSpec pipeline has work to overlap (and v7x's 2 TCs both get steps)."""
    bt_cap = max(1, tile_budget_bytes // per_image_bytes)
    if B >= 4:
        bt_cap = min(bt_cap, B // 4)   # >= 4 grid steps
    elif B >= 2:
        bt_cap = min(bt_cap, B // 2)   # >= 2 grid steps
    return max(1, min(B, bt_cap))


def channel_attention(x, w1, w2, *, tile_budget_bytes=8 * 1024 * 1024):
    """x: (B, C, H, W); w1, w2: (C, C) 1x1-conv weights (out, in)."""
    B, C, H, W = x.shape
    HW = H * W
    itemsize = jnp.dtype(x.dtype).itemsize
    w_itemsize = jnp.dtype(w1.dtype).itemsize
    w_bytes = 2 * C * C * w_itemsize

    # Generation-aware budgeting: resident VMEM ~= 4x tile (double-buffered
    # x in + out) + small weights; keep it under ~75% of physical VMEM.
    vmem_cap = _vmem_capacity_bytes()
    tile_budget = max(1, min(int(tile_budget_bytes), (vmem_cap * 3 // 4) // 4))
    vmem_limit = int(min(vmem_cap * 3 // 4,
                         4 * tile_budget + 4 * w_bytes + (4 << 20)))
    vmem_limit = max(vmem_limit, 8 * 1024 * 1024)

    # Free reshape for NCHW-contiguous x: lane dim becomes H*W (lane-dense).
    # TODO(synk): for HW that is not a multiple of 128 (e.g. 7x7 SE blocks)
    # lane utilization drops and stores become masked; an NHWC-tile layout
    # (C on lanes) would fix that but is not needed for these shapes.
    x_flat = x.reshape(B, C, HW)
    per_image_bytes = C * HW * itemsize

    if per_image_bytes <= tile_budget:
        # ------------------------------------------------------------------
        # Single-pass fused path: whole image(s) per grid step, 2x HBM traffic.
        # ------------------------------------------------------------------
        Bt = _pick_batch_tile(B, per_image_bytes, tile_budget)
        grid_b = pl.cdiv(B, Bt)          # ragged last block: rows independent,
                                         # padded rows' output is discarded.
        kernel = functools.partial(channel_attention_kernel, inv_hw=1.0 / float(HW))
        w1t = jnp.transpose(w1)          # (C_in, C_out), transposed once in XLA
        w2t = jnp.transpose(w2)

        cost = pl.CostEstimate(
            flops=int(4 * B * C * C + 3 * B * C * HW),
            transcendentals=int(B * C),
            bytes_accessed=int(2 * B * C * HW * itemsize + w_bytes),
        )

        out = pl.pallas_call(
            kernel,
            out_shape=jax.ShapeDtypeStruct((B, C, HW), x.dtype),
            grid_spec=pltpu.PrefetchScalarGridSpec(
                num_scalar_prefetch=0,
                grid=(grid_b,),
                in_specs=[
                    pl.BlockSpec((Bt, C, HW), lambda b: (b, 0, 0)),
                    pl.BlockSpec((C, C), lambda b: (0, 0)),   # constant index ->
                    pl.BlockSpec((C, C), lambda b: (0, 0)),   # fetched once
                ],
                out_specs=pl.BlockSpec((Bt, C, HW), lambda b: (b, 0, 0)),
            ),
            compiler_params=pltpu.CompilerParams(
                dimension_semantics=("parallel",),
                vmem_limit_bytes=vmem_limit,
            ),
            cost_estimate=cost,
        )(x_flat, w1t, w2t)
        return out.reshape(B, C, H, W)

    # ----------------------------------------------------------------------
    # Two-pass fallback (image too large for one VMEM tile, e.g. big images on
    # v7x's 64 MiB VMEM): gates via one streaming XLA reduce + tiny matmuls,
    # then a spatially sub-tiled Pallas broadcast-multiply. Total HBM traffic
    # is 3x (same as any pool-then-scale structure).
    # ----------------------------------------------------------------------
    pooled = jnp.mean(x_flat, axis=-1, dtype=jnp.float32)               # (B, C)
    h = jnp.maximum(jnp.dot(pooled, w1.astype(jnp.float32).T), 0.0)
    y = jax.nn.sigmoid(jnp.dot(h, w2.astype(jnp.float32).T))            # (B, C)
    gate = y.astype(x.dtype).reshape(B, C, 1)

    # Spatial tile: largest multiple of 128 lanes whose (C, S_t) slab fits.
    # TODO(synk): if even C*128*itemsize exceeds the budget (enormous C),
    # channel sub-tiling would be needed; not relevant for these shapes.
    lane_slab = C * itemsize * 128
    S_t = min(HW, 128 * max(1, tile_budget // max(lane_slab, 1)))
    if S_t != HW:
        S_t = max(128, (S_t // 128) * 128)
    grid_s = pl.cdiv(HW, S_t)

    cost = pl.CostEstimate(
        flops=int(B * C * HW),
        transcendentals=0,
        bytes_accessed=int(2 * B * C * HW * itemsize + B * C * itemsize),
    )

    out = pl.pallas_call(
        channel_scale_kernel,
        out_shape=jax.ShapeDtypeStruct((B, C, HW), x.dtype),
        grid_spec=pltpu.PrefetchScalarGridSpec(
            num_scalar_prefetch=0,
            grid=(B, grid_s),
            in_specs=[
                pl.BlockSpec((1, C, 1), lambda b, s: (b, 0, 0)),
                pl.BlockSpec((1, C, S_t), lambda b, s: (b, 0, s)),
            ],
            out_specs=pl.BlockSpec((1, C, S_t), lambda b, s: (b, 0, s)),
        ),
        compiler_params=pltpu.CompilerParams(
            dimension_semantics=("parallel", "parallel"),
            vmem_limit_bytes=vmem_limit,
        ),
        cost_estimate=cost,
    )(gate, x_flat)
    return out.reshape(B, C, H, W)


# ----------------------------------------------------------------------------
# Pure-JAX reference matching the PyTorch module.
# ----------------------------------------------------------------------------
def channel_attention_ref(x, w1, w2):
    xf = x.astype(jnp.float32)
    pooled = jnp.mean(xf, axis=(2, 3))                   # (B, C)
    h = jnp.maximum(pooled @ w1.astype(jnp.float32).T, 0.0)
    y = jax.nn.sigmoid(h @ w2.astype(jnp.float32).T)     # (B, C)
    return (xf * y[:, :, None, None]).astype(x.dtype)


if __name__ == "__main__":
    B, C, H, W = 2, 4, 16, 16

    key = jax.random.PRNGKey(0)
    kx, kw1, kw2 = jax.random.split(key, 3)

    x = jax.random.normal(kx, (B, C, H, W), dtype=jnp.float32)
    # 1x1-conv weights (PyTorch shape (C_out, C_in, 1, 1), squeezed to (C_out, C_in)).
    w1 = jax.random.normal(kw1, (C, C), dtype=jnp.float32) * 0.5
    w2 = jax.random.normal(kw2, (C, C), dtype=jnp.float32) * 0.5

    ref = channel_attention_ref(x, w1, w2)

    # Main single-pass fused path.
    out = jax.block_until_ready(channel_attention(x, w1, w2))
    assert out.shape == (B, C, H, W)
    assert jnp.allclose(out, ref, atol=1e-5, rtol=1e-5), "single-pass mismatch"

    # Force and validate the two-pass fallback (per-image tile over budget).
    out2 = jax.block_until_ready(channel_attention(x, w1, w2, tile_budget_bytes=2048))
    assert out2.shape == (B, C, H, W)
    assert jnp.allclose(out2, ref, atol=1e-5, rtol=1e-5), "two-pass mismatch"

    print("KERNEL_OK")
</pallas_src>

<mosaic_0001>
module attributes {stable_mosaic.version = 11 : i64} {
  func.func @channel_attention_kernel(%arg0: i32, %arg1: memref<1x4x256xf32, #tpu.memory_space<vmem>>, %arg2: memref<4x4xf32, #tpu.memory_space<vmem>>, %arg3: memref<4x4xf32, #tpu.memory_space<vmem>>, %arg4: memref<1x4x256xf32, #tpu.memory_space<vmem>>) attributes {dimension_semantics = [#tpu.dimension_semantics<parallel>], iteration_bounds = array<i64: 2>, scalar_prefetch = 0 : i64, scratch_operands = 0 : i64, tpu.core_type = #tpu.core_type<tc>, window_params = [{transform_indices = @transform_0, window_bounds = array<i64: 1, 4, 256>}, {pipeline_mode = #tpu.pipeline_mode<synchronous>, transform_indices = @transform_1, window_bounds = array<i64: 4, 4>}, {pipeline_mode = #tpu.pipeline_mode<synchronous>, transform_indices = @transform_2, window_bounds = array<i64: 4, 4>}, {transform_indices = @transform_3, window_bounds = array<i64: 1, 4, 256>}]} {
    %c0 = arith.constant 0 : index
    %c0_0 = arith.constant 0 : index
    %c0_1 = arith.constant 0 : index
    %0 = vector.load %arg1[%c0, %c0_0, %c0_1] : memref<1x4x256xf32, #tpu.memory_space<vmem>>, vector<1x4x256xf32>
    %cst = arith.constant dense<0.000000e+00> : vector<1x4xf32>
    %1 = vector.multi_reduction <add>, %0, %cst [2] : vector<1x4x256xf32> to vector<1x4xf32>
    %cst_2 = arith.constant 3.906250e-03 : f32
    %2 = vector.broadcast %cst_2 : f32 to vector<1x4xf32>
    %3 = arith.mulf %1, %2 : vector<1x4xf32>
    %c0_3 = arith.constant 0 : index
    %c0_4 = arith.constant 0 : index
    %4 = vector.load %arg2[%c0_3, %c0_4] : memref<4x4xf32, #tpu.memory_space<vmem>>, vector<4x4xf32>
    %c0_5 = arith.constant 0 : index
    %c0_6 = arith.constant 0 : index
    %5 = vector.load %arg3[%c0_5, %c0_6] : memref<4x4xf32, #tpu.memory_space<vmem>>, vector<4x4xf32>
    %cst_7 = arith.constant dense<0.000000e+00> : vector<1x4xf32>
    %6 = tpu.matmul %3, %4, %cst_7 {dimension_numbers = #tpu.dot_dimension_numbers<[1], [0], [0], [1], [0, 0, 1, 1], [], []>} : vector<1x4xf32>, vector<4x4xf32>, vector<1x4xf32> -> vector<1x4xf32>
    %cst_8 = arith.constant 0.000000e+00 : f32
    %7 = vector.broadcast %cst_8 : f32 to vector<1x4xf32>
    %8 = arith.maximumf %6, %7 : vector<1x4xf32>
    %cst_9 = arith.constant dense<0.000000e+00> : vector<1x4xf32>
    %9 = tpu.matmul %8, %5, %cst_9 {dimension_numbers = #tpu.dot_dimension_numbers<[1], [0], [0], [1], [0, 0, 1, 1], [], []>} : vector<1x4xf32>, vector<4x4xf32>, vector<1x4xf32> -> vector<1x4xf32>
    %10 = arith.negf %9 : vector<1x4xf32>
    %11 = math.exp %10 : vector<1x4xf32>
    %cst_10 = arith.constant 1.000000e+00 : f32
    %12 = vector.broadcast %cst_10 : f32 to vector<1x4xf32>
    %13 = arith.addf %12, %11 : vector<1x4xf32>
    %14 = arith.divf %12, %13 : vector<1x4xf32>
    %15 = vector.shape_cast %14 : vector<1x4xf32> to vector<1x4x1xf32>
    %c0_11 = arith.constant 0 : index
    %c0_12 = arith.constant 0 : index
    %c0_13 = arith.constant 0 : index
    %16 = vector.load %arg1[%c0_11, %c0_12, %c0_13] : memref<1x4x256xf32, #tpu.memory_space<vmem>>, vector<1x4x256xf32>
    %17 = vector.broadcast %15 : vector<1x4x1xf32> to vector<1x4x256xf32>
    %18 = arith.mulf %16, %17 : vector<1x4x256xf32>
    %c0_14 = arith.constant 0 : index
    %c0_15 = arith.constant 0 : index
    %c0_16 = arith.constant 0 : index
    %19 = vector.load %arg4[%c0_14, %c0_15, %c0_16] : memref<1x4x256xf32, #tpu.memory_space<vmem>>, vector<1x4x256xf32>
    tpu.vector_store %arg4[%c0_14, %c0_15, %c0_16], %18 {strides = array<i32>} : memref<1x4x256xf32, #tpu.memory_space<vmem>>, vector<1x4x256xf32>,
    return
  }
  func.func @transform_0(%arg0: i32) -> (i32, i32, i32) {
    %c0_i32 = arith.constant 0 : i32
    %c0_i32_0 = arith.constant 0 : i32
    %c0_i32_1 = arith.constant 0 : i32
    return %arg0, %c0_i32, %c0_i32_0 : i32, i32, i32
  }
  func.func @transform_1(%arg0: i32) -> (i32, i32) {
    %c0_i32 = arith.constant 0 : i32
    %c0_i32_0 = arith.constant 0 : i32
    %c0_i32_1 = arith.constant 0 : i32
    return %c0_i32, %c0_i32_0 : i32, i32
  }
  func.func @transform_2(%arg0: i32) -> (i32, i32) {
    %c0_i32 = arith.constant 0 : i32
    %c0_i32_0 = arith.constant 0 : i32
    %c0_i32_1 = arith.constant 0 : i32
    return %c0_i32, %c0_i32_0 : i32, i32
  }
  func.func @transform_3(%arg0: i32) -> (i32, i32, i32) {
    %c0_i32 = arith.constant 0 : i32
    %c0_i32_0 = arith.constant 0 : i32
    %c0_i32_1 = arith.constant 0 : i32
    return %arg0, %c0_i32, %c0_i32_0 : i32, i32, i32
  }
}

</mosaic_0001>

<bundles_post_ra>
// kernel: tpu_custom_call.1
= control target key start
LH: loop header
LB: loop body
LE: loop exit
PB: predicated region body
PF: predicated region fallthrough
CT: control target
= control target key end

     0   :  { %8 = vsyncpa [#allocation3], 0  ;;  %s962_s0 = inlined_call_operand.hbm [shape: f32[2,4,256], index: 0, kind: input, shape index: {}]   ;;  %s963_s1 = inlined_call_operand.hbm [shape: f32[4,4], index: 1, kind: input, shape index: {}]   ;;  %s964_s2 = inlined_call_operand.vmem [shape: f32[4,4], index: 2, kind: input, shape index: {}]   ;;  %s965_s3 = inlined_call_operand.hbm [shape: f32[2,4,256], index: 3, kind: output, shape index: {}]  }
   0x1   :  { %10 = vsyncpa [#allocation3 + $0x1], 0 }
   0x2   :  { %11 = vsyncpa [#allocation6], 0 }
   0x3   :  { %12 = vsyncpa [#allocation4], 0 }
   0x4   :  { %14 = vsyncpa [#allocation4 + $0x1], 0  ;;  %s750_s12 = smov 0   ;;  %s752_s13 = smov 0  }
   0x5   :  { %s754_s14 = smov 0   ;;  %s756_s15 = smov 0  }
   0x6 LB: > { %s771_s16 = sadd.s32 4294967295, %s722_s15   ;;  %s492_s17 = sadd.s32 4294967294, %s722_s15   ;;  %s722_s15 = sphi %s756_s15, %s989_s15   ;;  %s718_s14 = sphi %s754_s14, %s988_s14   ;;  %s714_s13 = sphi %s752_s13, %s987_s13   ;;  %s710_s12 = sphi %s750_s12, %s986_s12  }
   0x7   : > { %p40_p0 = scmp.ne.s32.totalorder %s714_s13, %s710_s12  ;;  %p966_p1 = scmp.eq.s32.totalorder %s771_s16, 0 }
   0x8   : > { %p112_p3 = scmp.eq.s32.totalorder %s492_s17, 1  ;;  %p493_p5 = scmp.ge.s32.totalorder %s722_s15, 1 }
   0x9   : > { %p780_p4 = por %p966_p1, %p40_p0  ;;  %p119_p7 = scmp.lt.s32.totalorder %s722_s15, 3 }
   0xa   : > { %p785_p6 = por %p112_p3, %p40_p0  ;;  %s724_s21 = smov [#allocation5]  }
   0xb   : > { %s969_s18 = scalar_select %p780_p4, 1, 0 }
   0xc   : > { %s970_s19 = scalar_select %p785_p6, 1, 0 }
   0xd   : > { %p790_p8 = pnand %p493_p5, %p119_p7  ;;  %s132_s22 = sshll.u32 %s724_s21, 4  ;;  %s133_s22 = int_to_ptr.vmem [resolvable:$true] %s132_s22 }
   0xe   : > { %s798_s23 = sadd.s32 1, %s722_s15   ;;  %s27_s27 = sadd.s32 1, %s718_s14 }
   0xf   : > { %s971_s20 = scalar_select %p790_p8, 1, 0 }
  0x10   : > { %p537_p10 = pneg %p790_p8  ;;  %s24_s25 = ssub.s32 %s722_s15, %s798_s23 }
  0x11   : > { %p808_p12 = scmp.eq.s32.totalorder %s24_s25, 0  ;;  %s594_s30 = scalar_lea.hbm %s963_s1, 64 }
  0x12   : > { %p802_p11 = pnand %p537_p10, %p966_p1  ;;  %p595_p0 = scmp.ne.s32.totalorder %s963_s1, %s594_s30 }
  0x13   : > { %s973_s26 = scalar_select %p808_p12, 1, 0 }
  0x14   : > { %p596_p3 = pneg %p802_p11  ;;  %p601_p10 = scmp.lt.u32.totalorder %s594_s30, %s963_s1 }
  0x16   : > { %p597_p5 = pnand %p596_p3, %p595_p0 }
  0x18   : > { %p598_p7 = pneg %p597_p5 }
  0x1a   : > { %p603_p9 = pnand %p601_p10, %p598_p7 }
  0x1c   : > { %606 = shalt.err (!%p603_p9)
}
  0x1d   : > { %s607_s8 = scalar_lea.vmem %s133_s22, 64  ;;  %p615_p6 = scmp.lt.s32.totalorder %s133_s22, %s133_s22 }
  0x1e   : > { %p608_p1 = scmp.ne.s32.totalorder %s133_s22, %s607_s8  ;;  %p616_p4 = scmp.lt.s32.totalorder %s607_s8, %s607_s8 }
  0x20   : > { %p610_p2 = pnand %p608_p1, %p596_p3  ;;  %p617_p8 = por %p616_p4, %p615_p6 }
  0x22   : > { %p611_p13 = pneg %p610_p2 }
  0x24   : > { %p618_p12 = pnand %p617_p8, %p611_p13 }
  0x26   : > { %621 = shalt.err (!%p618_p12)
}
  0x27   : > { %540 = dma.hbm_to_vmem [thread:$0]  (!%p802_p11), %s963_s1, 64, %s133_s22, [#allocation6]  }
  0x28   : > { %p974_p1 = scmp.ne.s32.totalorder %s973_s26, 0  ;;  %p35_p2 = scmp.eq.s32.totalorder %s722_s15, 0 }
  0x29   : > { %p975_p4 = scmp.ne.s32.totalorder %s718_s14, %s714_s13  ;;  %p976_p6 = scmp.eq.s32.totalorder %s771_s16, 1 }
  0x2a   : > { %s834_s11 = scalar_select %p974_p1, %s718_s14, %s27_s27  }
  0x2b   : > { %p842_p8 = por %p976_p6, %p975_p4  ;;  %p550_p9 = scmp.lt.s32.totalorder %s722_s15, 2 }
  0x2c   : > { %s146_s21 = sand.u32 1, %s718_s14   ;;  %p978_p12 = pmov %p975_p4 }
  0x2d   : > { %s496_s24 = sshll.u32 %s146_s21, 3  ;;  %s513_s25 = sshll.u32 %s722_s15, 7 }
  0x2e   : > { %p36_p13 = por %p35_p2, %p978_p12  ;;  %s855_s22 = scalar_lea.hbm %s962_s0, %s513_s25 }
  0x2f   : > { %s150_s26 = scalar_lea.vmem [#allocation2], %s496_s24  ;;  %s147_s4 = scalar_lea.sflag [#allocation3], %s146_s21 }
  0x30   : > { %s158_s27 = sshll.u32 %s150_s26, 4  ;;  %p857_p11 = pnand %p550_p9, %p36_p13  ;;  %s861_s27 = int_to_ptr.vmem [resolvable:$true] %s158_s27 }
  0x31   : > { %s622_s5 = scalar_lea.hbm %s855_s22, 128  ;;  %s627_s8 = scalar_lea.hbm %s962_s0, 256 }
  0x32   : > { %p623_p0 = scmp.ne.s32.totalorder %s855_s22, %s622_s5  ;;  %p624_p3 = pneg %p857_p11 }
  0x33   : > { %p628_p10 = scmp.lt.u32.totalorder %s855_s22, %s962_s0  ;;  %p629_p1 = scmp.lt.u32.totalorder %s627_s8, %s622_s5 }
  0x34   : > { %p625_p5 = pnand %p624_p3, %p623_p0  ;;  %p631_p4 = scmp.lt.u32.totalorder %s622_s5, %s855_s22 }
  0x35   : > { %p630_p2 = por %p629_p1, %p628_p10 }
  0x36   : > { %p626_p7 = pneg %p625_p5 }
  0x37   : > { %p632_p6 = por %p631_p4, %p630_p2 }
  0x39   : > { %p633_p9 = pnand %p632_p6, %p626_p7 }
  0x3b   : > { %636 = shalt.err (!%p633_p9)
}
  0x3c   : > { %s637_s21 = scalar_lea.vmem %s861_s27, 128  ;;  %s725_s24 = smov [#allocation2]  }
  0x3d   : > { %p638_p12 = scmp.ne.s32.totalorder %s861_s27, %s637_s21  ;;  %s642_s25 = sshll.u32 %s725_s24, 4  ;;  %s643_s25 = int_to_ptr.vmem [resolvable:$false] %s642_s25 }
  0x3e   : > { %s644_s28 = scalar_lea.vmem %s643_s25, 256  ;;  %p645_p5 = scmp.lt.s32.totalorder %s861_s27, %s643_s25 }
  0x3f   : > { %p640_p13 = pnand %p638_p12, %p624_p3  ;;  %p646_p10 = scmp.lt.s32.totalorder %s644_s28, %s637_s21 }
  0x41   : > { %p641_p0 = pneg %p640_p13  ;;  %p647_p1 = por %p646_p10, %p645_p5 }
  0x43   : > { %p648_p2 = pnand %p647_p1, %p641_p0 }
  0x45   : > { %651 = shalt.err (!%p648_p2)
}
  0x46   : > { %544 = dma.hbm_to_vmem [thread:$0]  (!%p857_p11), %s855_s22, 128, %s861_s27, %s147_s4  }
  0x47   : > { %p980_p7 = scmp.ne.s32.totalorder %s971_s20, 0 }
  0x48   : > { %s891_s29 = sand.u32 (!%p980_p7), 1, %s714_s13   ;;  %p981_p3 = scmp.ne.s32.totalorder (!%p980_p7), %s969_s18, 0 }
  0x49   : > { %167 = sbr.rel (%p980_p7) target bundleno = 823 (0x337), region = 32  ;;  %s500_s26 = sshll.u32 (!%p980_p7), %s891_s29, 3 }
  0x4a   : > { %s170_s5 = scalar_lea.sflag (!%p980_p7), [#allocation3], %s891_s29  ;;  %s173_s6 = scalar_lea.vmem (!%p980_p7), [#allocation2], %s500_s26 }
  0x50   : > { %697 = dma.done.wait (%p981_p3), %s170_s5, 128  }
  0x51   : > { %699 = vsyncadd (%p981_p3), %s170_s5, 4294967168  ;;  %p982_p11 = scmp.eq.s32.totalorder %s771_s16, 0 }
  0x53   : > { %701 = dma.done.wait (%p982_p11), [#allocation6], 64   ;;  %p983_p4 = pmov %p982_p11 }
  0x54   : > { %vm204_vm0 = vcmask 1043456   ;;  %v200_v0 = vld [vmem:[%s173_s6] sm:$0xff]  ;;  %v726_v5 = vmov 0.0   ;;  %v211_v6 = vld [vmem:[#allocation5] sm:$0xf]  ;;  %vm727_vm1 = vmmov 0   ;;  %v214_v7 = vlaneseq }
  0x55   : > { %703 = vsyncadd (%p983_p4), [#allocation6], 4294967232  ;;  %v202_v1 = vcombine.high %v200_v0, %v200_v0  ;;  %v205_v2 = vsel %vm204_vm0, %v200_v0, 0.0  ;;  %519 = vmatprep.subr.mxu0 %v726_v5  ;;  %524 = vmatprep.subr.mxu1 %v726_v5  ;;  %vm220_vm2 = vcmask 31744   ;;  %v212_v14 = vld [vmem:[%s964_s2] sm:$0xf] }
  0x56   : > { %520 = vmatpush3.msk.msra.mxu0 %vm204_vm0, %v211_v6  ;;  %521 = vmatprep.mubr.msk.f32.mxu0 %vm727_vm1, %v726_v5  ;;  %v215_v8 = vand.u32 127, %v214_v7  ;;  %v217_v9 = vshrl.u32 %v214_v7, 7  ;;  %v728_v26 = vmov 839922192   ;;  %s514_s22 = sshll.u32 %s771_s16, 7  ;;  %s199_s27 = scalar_lea.vmem [#allocation7], %s500_s26 }
  0x57   : > { %v206_v3 = vsel %vm204_vm0, %v202_v1, 0.0  ;;  %526 = vmatprep.mubr.msk.f32.mxu1 %vm727_vm1, %v726_v5  ;;  %525 = vmatpush3.msk.msra.mxu1 %vm204_vm0, %v212_v14  ;;  %v388_v27 = vunpack.c.l.s4 %v728_v26  ;;  %s412_s30 = sshll.u32 %s199_s27, 4  ;;  %s918_s8 = scalar_lea.hbm %s965_s3, %s514_s22  ;;  %s920_s30 = int_to_ptr.vmem [resolvable:$true] %s412_s30 }
  0x58   : > { %v207_v4 = vadd.f32 %v206_v3, %v205_v2  ;;  %v218_v10 = vsub.s32 %v215_v8, %v217_v9  ;;  %v381_v23 = vsub.s32 0, %v217_v9  ;;  %s398_s9 = scalar_lea.sflag [#allocation4], %s891_s29  ;;  %s652_s10 = scalar_lea.vmem %s920_s30, 128 }
  0x59   : > { %v389_v28 = vunpack.c.0.s8 %v388_v27  ;;  %p653_p6 = scmp.ne.s32.totalorder %s920_s30, %s652_s10  ;;  %s729_s16 = smov [#allocation7]  }
  0x5a   : > { %208 = vadd.xlane.f32.xlu0 %v207_v4  ;;  %s656_s21 = sshll.u32 %s729_s16, 4  ;;  %s657_s21 = int_to_ptr.vmem [resolvable:$false] %s656_s21 }
  0x5b   : > { %v392_v29 = vsub.s32 %v389_v28, %v217_v9  ;;  %p654_p9 = pnand %p653_p6, %p842_p8  ;;  %s658_s24 = scalar_lea.vmem %s657_s21, 256 }
  0x5c   : > { %p659_p13 = scmp.lt.s32.totalorder %s920_s30, %s657_s21  ;;  %p660_p0 = scmp.lt.s32.totalorder %s658_s24, %s652_s10 }
  0x5d   : > { %p655_p12 = pneg %p654_p9 }
  0x5e   : > { %p661_p5 = por %p660_p0, %p659_p13 }
  0x60   : > { %p662_p10 = pnand %p661_p5, %p655_p12 }
  0xe7   : > { %v209_v11 = vpop.xlane.xlu0 %208 }
  0xe8   : > { %v210_v12 = vmul.f32 0.00390625, %v209_v11 }
  0xea   : > { %v219_v13 = vrot.slane %v210_v12, %v218_v10 }
  0xec   : > { %522 = vmatmul.mubr.msk.f32.vlgmr.msra.gmra.mrb[0].mxu0 %vm220_vm2, %v219_v13 }
 0x1bf   : > { %v292_v15 = vpop.f32.mrb[0].mxu0 }
 0x1c0   : > { %v296_v16 = vmax.f32 %v292_v15, 0.0  ;;  %v523_v17 = vpop.f32.mrb[1].mxu0 }
 0x1c2   : > { %527 = vmatmul.mubr.msk.f32.vlgmr.msra.gmra.mrb[0].mxu1 %vm220_vm2, %v296_v16 }
 0x295   : > { %v369_v18 = vpop.f32.mrb[0].mxu1 }
 0x296   : > { %v507_v19 = vmul.f32 -1.442695, %v369_v18  ;;  %v528_v20 = vpop.f32.mrb[1].mxu1 }
 0x298   : > { %590 = vpow2.f32 %v507_v19 }
 0x2a2   : > { %v591_v21 = vpop.eup %590 }
 0x2a3   : > { %v376_v22 = vadd.f32 1.0, %v591_v21 }
 0x2a5   : > { %592 = vrcp.f32 %v376_v22 }
 0x2af   : > { %v593_v24 = vpop.eup %592 }
 0x2b0   : > { %v382_v25 = vrot.slane %v593_v24, %v381_v23 }
 0x2b2   : > { %384 = vbcast.lane.b32.xlu0 %v382_v25, 256 }
 0x324   : > { %v385_v30 = vpop.permute.xlu0 %384 }
 0x325   : > { %v393_v31 = vrot.slane %v385_v30, %v392_v29 }
 0x327   : > { %v395_v32 = vmul.f32 %v393_v31, %v200_v0 }
 0x329   : > { %396 = vst [vmem:[%s199_s27] sm:$0xff] %v395_v32 }
 0x32a   : > { %665 = shalt.err (!%p662_p10)
}
 0x32b   : > { %s666_s25 = scalar_lea.hbm %s918_s8, 128  ;;  %s670_s26 = scalar_lea.hbm %s965_s3, 256 }
 0x32c   : > { %p667_p1 = scmp.ne.s32.totalorder %s918_s8, %s666_s25  ;;  %p671_p3 = scmp.lt.u32.totalorder %s918_s8, %s965_s3 }
 0x32d   : > { %p672_p11 = scmp.lt.u32.totalorder %s670_s26, %s666_s25  ;;  %p674_p6 = scmp.lt.u32.totalorder %s666_s25, %s918_s8 }
 0x32e   : > { %p668_p2 = pnand %p667_p1, %p842_p8 }
 0x32f   : > { %p673_p4 = por %p672_p11, %p671_p3 }
 0x330   : > { %p669_p7 = pneg %p668_p2 }
 0x331   : > { %p675_p9 = por %p674_p6, %p673_p4 }
 0x333   : > { %p676_p12 = pnand %p675_p9, %p669_p7 }
 0x335   : > { %679 = shalt.err (!%p676_p12)
}
 0x336   : > { %535 = dma.vmem_to_hbm [thread:$0]  (%p842_p8), %s920_s30, 128, %s918_s8, %s398_s9  }
 0x337 PF: > { %s424_s18 = sand.u32 1, %s710_s12   ;;  %p984_p13 = scmp.ne.s32.totalorder %s970_s19, 0 }
 0x338   : > { %p985_p0 = scmp.ge.s32.totalorder %s722_s15, 2  ;;  %s425_s20 = scalar_lea.sflag [#allocation4], %s424_s18 }
 0x33a   : > { %p546_p5 = pnand %p985_p0, %p984_p13 }
 0x33c   : > { %705 = dma.done.wait (!%p546_p5), %s425_s20, 128  }
 0x33d   : > { %707 = vsyncadd (!%p546_p5), %s425_s20, 4294967168  ;;  %p17_p10 = scmp.ge.s32.totalorder %s798_s23, 4   ;;  %s986_s12 = smov %s714_s13 }
 0x33e   : > { %s987_s13 = smov %s718_s14  ;;  %s988_s14 = smov %s834_s11 }
 0x33f   : > { %s989_s15 = smov %s798_s23  ;;  %19 = sbr.rel (!%p17_p10) target bundleno = 6 (0x6), region = 81 }
 0x346   :  { %430 = vsyncpa [#allocation3], 1 }
 0x347   :  { %432 = vsyncpa [#allocation3 + $0x1], 1 }
 0x348   :  { %433 = vsyncpa [#allocation6], 1 }
 0x349   :  { %434 = vsyncpa [#allocation4], 1 }
 0x34a   :  { %436 = vsyncpa [#allocation4 + $0x1], 1 }

</bundles_post_ra>
